<compile_context>
chip_gen: v7x
topology: tpu7x:2x2x1
jax: 0.10.0
libtpu: 0.0.40
codegen_flags: <defaults>
</compile_context>

<pallas_src>
import functools
import math

import jax
import jax.numpy as jnp
from jax.experimental import pallas as pl
from jax.experimental.pallas import tpu as pltpu


def _sharpen_kernel(factor_ref, x_ref, o_ref, *, h_img, w_img):
    """x_ref/o_ref: (R, C) block holding whole (h_img, w_img) image strips.

    Rows repeat with period h_img (strips packed along sublanes) and columns with
    period w_img (strips packed along lanes); block boundaries are strip-aligned,
    so the only pixels contaminated by roll wrap-around are the 1-pixel strip
    borders, which are masked to pass-through below.
    """
    x = x_ref[...]
    xf = x.astype(jnp.float32)          # accumulate the 13-tap sum in f32
    R, C = xf.shape
    f = factor_ref[0, 0].astype(jnp.float32)

    # 3x3 blur [[1,1,1],[1,5,1],[1,1,1]]/13 via XLU rolls (partial separability).
    row = xf + pltpu.roll(xf, 1, 1) + pltpu.roll(xf, C - 1, 1)      # lane neighbours
    acc = row + pltpu.roll(row, 1, 0) + pltpu.roll(row, R - 1, 0)   # sublane neighbours
    blur = jnp.clip((acc + 4.0 * xf) * (1.0 / 13.0), 0.0, 1.0)

    # 1-pixel border of every strip: blur falls back to the original pixel, so
    # f*x + (1-f)*blur == x there and the final clip yields clamp(x) (reference
    # semantics).  Masks built from tiny (R,1)/(1,C) iotas, broadcast-OR'd once.
    r = jax.lax.broadcasted_iota(jnp.int32, (R, 1), 0)
    c = jax.lax.broadcasted_iota(jnp.int32, (1, C), 1)
    if h_img != R:
        r = r % h_img
    if w_img != C:
        c = c % w_img
    border = ((r == 0) | (r == h_img - 1)) | ((c == 0) | (c == w_img - 1))
    blur = jnp.where(border, xf, blur)

    o_ref[...] = jnp.clip(f * xf + (1.0 - f) * blur, 0.0, 1.0).astype(o_ref.dtype)


def _tpu_vmem_bytes():
    """Physical VMEM per core, with a conservative (v7x-sized) fallback."""
    try:
        return int(pltpu.get_tpu_info().vmem_capacity_bytes)
    except Exception:
        return 64 * 1024 * 1024


def _budgets():
    vmem = _tpu_vmem_bytes()
    if vmem >= 100 * 1024 * 1024:
        # v5e / v6e: 128 MiB VMEM.  ~7x footprint (2 in + 2 out buffers + temps)
        # of an 8 MiB block stays under a 64 MiB scoped limit.
        return 8 * 1024 * 1024, 64 * 1024 * 1024
    # v7x: 64 MiB VMEM -> stay conservative.
    return 3 * 1024 * 1024, 32 * 1024 * 1024


def _prefer_even_steps(cands, total):
    """Pick the largest tile, preferring >= 2 grid steps with an even count."""
    multi = [t for t in cands if total // t >= 2]
    if multi:
        even = [t for t in multi if (total // t) % 2 == 0]
        return max(even) if even else max(multi)
    return max(cands)


def _pick_lane_tile(lane_total, W, H, itemsize, block_budget):
    """Tile (and padded extent) for the lane axis of the (H, B*W) packed layout."""
    step = W * 128 // math.gcd(W, 128)                 # lcm(W, 128): strip & vreg aligned
    if step > lane_total or H * step * itemsize > block_budget:
        # TODO(synk): halo-aware H split for very tall planes with non-tileable W.
        return lane_total, lane_total
    fits = lambda t: H * t * itemsize <= block_budget
    cands = [t for t in range(step, lane_total + 1, step)
             if lane_total % t == 0 and fits(t)]
    if cands:
        return _prefer_even_steps(cands, lane_total), lane_total
    # No clean divisor: pad the lane axis up to a multiple of the largest fitting tile.
    t = max(t for t in range(step, lane_total + 1, step) if fits(t))
    padded = -(-lane_total // t) * t
    return t, padded


def _pick_row_tile(rows_total, H, W, itemsize, block_budget):
    """Tile (and padded extent) for the row axis of the (B*H, W) natural layout."""
    step = H * 8 // math.gcd(H, 8)                     # lcm(H, 8): image & sublane aligned
    plane = W * itemsize
    if step > rows_total or step * plane > block_budget:
        # TODO(synk): halo-aware H split for single planes larger than the block budget.
        return rows_total, rows_total
    fits = lambda t: t * plane <= block_budget
    cands = [t for t in range(step, rows_total + 1, step)
             if rows_total % t == 0 and fits(t)]
    if cands:
        return _prefer_even_steps(cands, rows_total), rows_total
    t = max(t for t in range(step, rows_total + 1, step) if fits(t))
    padded = -(-rows_total // t) * t
    return t, padded


def _run(x2d, factor_arr, block_shape, index_map, grid, h_img, w_img, vmem_limit):
    R, C = x2d.shape
    return pl.pallas_call(
        functools.partial(_sharpen_kernel, h_img=h_img, w_img=w_img),
        out_shape=jax.ShapeDtypeStruct((R, C), x2d.dtype),
        grid_spec=pltpu.PrefetchScalarGridSpec(
            num_scalar_prefetch=0,
            grid=grid,
            in_specs=[
                pl.BlockSpec((1, 1), lambda i: (0, 0),
                             memory_space=pltpu.MemorySpace.SMEM),   # factor scalar
                pl.BlockSpec(block_shape, index_map),
            ],
            out_specs=pl.BlockSpec(block_shape, index_map),
        ),
        compiler_params=pltpu.CompilerParams(
            dimension_semantics=("parallel",),
            vmem_limit_bytes=vmem_limit,
        ),
    )(factor_arr, x2d)


def sharpen(image, factor):
    """Pallas sharpness adjustment. image: (N, C, H, W) float array in [0, 1]."""
    if not jnp.issubdtype(image.dtype, jnp.floating):
        raise ValueError("sharpen expects a float image normalized to [0, 1]")
    N, C, H, W = image.shape
    B = N * C
    itemsize = jnp.dtype(image.dtype).itemsize
    block_budget, vmem_limit = _budgets()
    factor_arr = jnp.asarray(factor, dtype=jnp.float32).reshape((1, 1))

    if W >= 128:
        # Natural layout: (N,C,H,W) -> (B*H, W) is a free reshape -> no extra HBM pass.
        rows_total = B * H
        x2d = image.reshape(rows_total, W)
        tbh, padded = _pick_row_tile(rows_total, H, W, itemsize, block_budget)
        if padded != rows_total:
            x2d = jnp.pad(x2d, ((0, padded - rows_total), (0, 0)))
        grid = (padded // tbh,)
        out2d = _run(x2d, factor_arr, (tbh, W), lambda i: (i, 0), grid, H, W, vmem_limit)
        if padded != rows_total:
            out2d = out2d[:rows_total]
        return out2d.reshape(N, C, H, W)

    # Small W (<128): lane-pack channels along lanes so stores stay lane-dense.
    # The pack/unpack transposes cost extra HBM traffic, but only for small images.
    lane_total = B * W
    xp = image.reshape(B, H, W).transpose(1, 0, 2).reshape(H, lane_total)
    tl, padded = _pick_lane_tile(lane_total, W, H, itemsize, block_budget)
    if padded != lane_total:
        xp = jnp.pad(xp, ((0, 0), (0, padded - lane_total)))
    grid = (padded // tl,)
    out = _run(xp, factor_arr, (H, tl), lambda i: (0, i), grid, H, W, vmem_limit)
    if padded != lane_total:
        out = out[:, :lane_total]
    return out.reshape(H, B, W).transpose(1, 0, 2).reshape(N, C, H, W)


def sp_forward(image_cover, factor):
    """SP.forward: takes (image, cover_image), sharpens and returns only `image`."""
    image, cover_image = image_cover
    del cover_image  # SP ignores the cover image
    return sharpen(image, factor)


def _reference(image, factor):
    """Pure-JAX reference with identical semantics (for a correctness check)."""
    x = image.astype(jnp.float32)
    N, C, H, W = x.shape
    acc = jnp.zeros((N, C, H - 2, W - 2), jnp.float32)
    wts = [[1., 1., 1.], [1., 5., 1.], [1., 1., 1.]]
    for di in range(3):
        for dj in range(3):
            acc = acc + wts[di][dj] * x[:, :, di:H - 2 + di, dj:W - 2 + dj]
    blur = jnp.clip(acc / 13.0, 0.0, 1.0)
    out = jnp.clip(x, 0.0, 1.0)
    interior = jnp.clip(factor * x[:, :, 1:-1, 1:-1] + (1.0 - factor) * blur, 0.0, 1.0)
    return out.at[:, :, 1:-1, 1:-1].set(interior).astype(image.dtype)


if __name__ == "__main__":
    key = jax.random.PRNGKey(0)
    k1, k2, k3 = jax.random.split(key, 3)
    factor = 2.0  # sharpening strength (module __init__ arg)

    # Small-W image (module-typical shape): exercises the lane-packed path.
    image = jax.random.uniform(k1, (2, 4, 16, 16), dtype=jnp.float32)        # in [0, 1]
    cover_image = jax.random.uniform(k2, (2, 4, 16, 16), dtype=jnp.float32)  # unused by SP
    out = jax.block_until_ready(sp_forward((image, cover_image), factor))
    assert out.shape == image.shape and out.dtype == image.dtype
    ref = jax.block_until_ready(_reference(image, factor))
    assert float(jnp.max(jnp.abs(out - ref))) < 1e-5, "mismatch vs reference (packed path)"

    # Wide image (W >= 128): exercises the transpose-free natural-layout path.
    image2 = jax.random.uniform(k3, (2, 3, 16, 128), dtype=jnp.float32)
    out2 = jax.block_until_ready(sharpen(image2, factor))
    ref2 = jax.block_until_ready(_reference(image2, factor))
    assert float(jnp.max(jnp.abs(out2 - ref2))) < 1e-5, "mismatch vs reference (natural path)"

    print("KERNEL_OK")
</pallas_src>

<mosaic_0001>
module attributes {stable_mosaic.version = 11 : i64} {
  func.func @_sharpen_kernel(%arg0: i32, %arg1: memref<1x1xf32, #tpu.memory_space<smem>>, %arg2: memref<16x128xf32, #tpu.memory_space<vmem>>, %arg3: memref<16x128xf32, #tpu.memory_space<vmem>>) attributes {dimension_semantics = [#tpu.dimension_semantics<parallel>], iteration_bounds = array<i64: 1>, scalar_prefetch = 0 : i64, scratch_operands = 0 : i64, tpu.core_type = #tpu.core_type<tc>, window_params = [{transform_indices = @transform_0, window_bounds = array<i64: 1, 1>}, {transform_indices = @transform_1, window_bounds = array<i64: 16, 128>}, {transform_indices = @transform_2, window_bounds = array<i64: 16, 128>}]} {
    %c0 = arith.constant 0 : index
    %c0_0 = arith.constant 0 : index
    %0 = vector.load %arg2[%c0, %c0_0] : memref<16x128xf32, #tpu.memory_space<vmem>>, vector<16x128xf32>
    %c0_1 = arith.constant 0 : index
    %c0_2 = arith.constant 0 : index
    %1 = memref.load %arg1[%c0_1, %c0_2] : memref<1x1xf32, #tpu.memory_space<smem>>
    %c1_i32 = arith.constant 1 : i32
    %2 = tpu.dynamic_rotate %0 by %c1_i32 dim 1 : vector<16x128xf32>, i32 -> vector<16x128xf32>
    %3 = arith.addf %0, %2 : vector<16x128xf32>
    %c127_i32 = arith.constant 127 : i32
    %4 = tpu.dynamic_rotate %0 by %c127_i32 dim 1 : vector<16x128xf32>, i32 -> vector<16x128xf32>
    %5 = arith.addf %3, %4 : vector<16x128xf32>
    %c1_i32_3 = arith.constant 1 : i32
    %6 = tpu.dynamic_rotate %5 by %c1_i32_3 dim 0 : vector<16x128xf32>, i32 -> vector<16x128xf32>
    %7 = arith.addf %5, %6 : vector<16x128xf32>
    %c15_i32 = arith.constant 15 : i32
    %8 = tpu.dynamic_rotate %5 by %c15_i32 dim 0 : vector<16x128xf32>, i32 -> vector<16x128xf32>
    %9 = arith.addf %7, %8 : vector<16x128xf32>
    %cst = arith.constant 4.000000e+00 : f32
    %10 = vector.broadcast %cst : f32 to vector<16x128xf32>
    %11 = arith.mulf %10, %0 : vector<16x128xf32>
    %12 = arith.addf %9, %11 : vector<16x128xf32>
    %cst_4 = arith.constant 0.0769230798 : f32
    %13 = vector.broadcast %cst_4 : f32 to vector<16x128xf32>
    %14 = arith.mulf %12, %13 : vector<16x128xf32>
    %cst_5 = arith.constant 0.000000e+00 : f32
    %cst_6 = arith.constant 1.000000e+00 : f32
    %15 = vector.broadcast %cst_5 : f32 to vector<16x128xf32>
    %16 = arith.maximumf %15, %14 : vector<16x128xf32>
    %17 = vector.broadcast %cst_6 : f32 to vector<16x128xf32>
    %18 = arith.minimumf %17, %16 : vector<16x128xf32>
    %19 = tpu.iota {dimensions = array<i32: 0>} : vector<16x1xi32>
    %20 = tpu.iota {dimensions = array<i32: 1>} : vector<1x128xi32>
    %c16_i32 = arith.constant 16 : i32
    %c0_i32 = arith.constant 0 : i32
    %21 = arith.cmpi eq, %c16_i32, %c0_i32 : i32
    %c1_i32_7 = arith.constant 1 : i32
    %22 = arith.select %21, %c1_i32_7, %c16_i32 : i32
    %23 = vector.broadcast %22 : i32 to vector<1x128xi32>
    %24 = arith.remsi %20, %23 : vector<1x128xi32>
    %c0_i32_8 = arith.constant 0 : i32
    %25 = vector.broadcast %c0_i32_8 : i32 to vector<1x128xi32>
    %26 = arith.cmpi ne, %24, %25 : vector<1x128xi32>
    %c0_i32_9 = arith.constant 0 : i32
    %27 = vector.broadcast %c0_i32_9 : i32 to vector<1x128xi32>
    %28 = arith.cmpi slt, %24, %27 : vector<1x128xi32>
    %c0_i32_10 = arith.constant 0 : i32
    %29 = arith.cmpi slt, %22, %c0_i32_10 : i32
    %30 = vector.broadcast %29 : i1 to vector<1x128xi1>
    %31 = vector.broadcast %30 : vector<1x128xi1> to vector<1x128xi1>
    %32 = arith.xori %28, %31 : vector<1x128xi1>
    %33 = arith.andi %32, %26 : vector<1x128xi1>
    %34 = vector.broadcast %22 : i32 to vector<1x128xi32>
    %35 = arith.addi %24, %34 : vector<1x128xi32>
    %36 = arith.select %33, %35, %24 : vector<1x128xi1>, vector<1x128xi32>
    %c0_i32_11 = arith.constant 0 : i32
    %37 = vector.broadcast %c0_i32_11 : i32 to vector<16x1xi32>
    %38 = arith.cmpi eq, %19, %37 : vector<16x1xi32>
    %c15_i32_12 = arith.constant 15 : i32
    %39 = vector.broadcast %c15_i32_12 : i32 to vector<16x1xi32>
    %40 = arith.cmpi eq, %19, %39 : vector<16x1xi32>
    %41 = arith.ori %38, %40 : vector<16x1xi1>
    %c0_i32_13 = arith.constant 0 : i32
    %42 = vector.broadcast %c0_i32_13 : i32 to vector<1x128xi32>
    %43 = arith.cmpi eq, %36, %42 : vector<1x128xi32>
    %c15_i32_14 = arith.constant 15 : i32
    %44 = vector.broadcast %c15_i32_14 : i32 to vector<1x128xi32>
    %45 = arith.cmpi eq, %36, %44 : vector<1x128xi32>
    %46 = arith.ori %43, %45 : vector<1x128xi1>
    %47 = vector.broadcast %41 : vector<16x1xi1> to vector<16x128xi1>
    %48 = vector.broadcast %46 : vector<1x128xi1> to vector<16x128xi1>
    %49 = arith.ori %47, %48 : vector<16x128xi1>
    %50 = arith.select %49, %0, %18 : vector<16x128xi1>, vector<16x128xf32>
    %51 = vector.broadcast %1 : f32 to vector<16x128xf32>
    %52 = arith.mulf %51, %0 : vector<16x128xf32>
    %cst_15 = arith.constant 1.000000e+00 : f32
    %53 = arith.subf %cst_15, %1 : f32
    %54 = vector.broadcast %53 : f32 to vector<16x128xf32>
    %55 = arith.mulf %54, %50 : vector<16x128xf32>
    %56 = arith.addf %52, %55 : vector<16x128xf32>
    %cst_16 = arith.constant 0.000000e+00 : f32
    %cst_17 = arith.constant 1.000000e+00 : f32
    %57 = vector.broadcast %cst_16 : f32 to vector<16x128xf32>
    %58 = arith.maximumf %57, %56 : vector<16x128xf32>
    %59 = vector.broadcast %cst_17 : f32 to vector<16x128xf32>
    %60 = arith.minimumf %59, %58 : vector<16x128xf32>
    %c0_18 = arith.constant 0 : index
    %c0_19 = arith.constant 0 : index
    %61 = vector.load %arg3[%c0_18, %c0_19] : memref<16x128xf32, #tpu.memory_space<vmem>>, vector<16x128xf32>
    tpu.vector_store %arg3[%c0_18, %c0_19], %60 {strides = array<i32>} : memref<16x128xf32, #tpu.memory_space<vmem>>, vector<16x128xf32>,
    return
  }
  func.func @transform_0(%arg0: i32) -> (i32, i32) {
    %c0_i32 = arith.constant 0 : i32
    %c0_i32_0 = arith.constant 0 : i32
    %c0_i32_1 = arith.constant 0 : i32
    return %c0_i32, %c0_i32_0 : i32, i32
  }
  func.func @transform_1(%arg0: i32) -> (i32, i32) {
    %c0_i32 = arith.constant 0 : i32
    %c0_i32_0 = arith.constant 0 : i32
    return %c0_i32, %arg0 : i32, i32
  }
  func.func @transform_2(%arg0: i32) -> (i32, i32) {
    %c0_i32 = arith.constant 0 : i32
    %c0_i32_0 = arith.constant 0 : i32
    return %c0_i32, %arg0 : i32, i32
  }
}

</mosaic_0001>

<bundles_post_ra>
// kernel: tpu_custom_call.1
= control target key start
LH: loop header
LB: loop body
LE: loop exit
PB: predicated region body
PF: predicated region fallthrough
CT: control target
= control target key end

     0   :  { %8 = vsyncpa [#allocation4], 0  ;;  %s251_s0 = inlined_call_operand.<no memory space> [shape: f32[1,1], index: 0, kind: input, shape index: {}]   ;;  %s252_s1 = inlined_call_operand.hbm [shape: f32[16,128], index: 1, kind: input, shape index: {}]   ;;  %s253_s2 = inlined_call_operand.hbm [shape: f32[16,128], index: 2, kind: output, shape index: {}]  }
   0x1   :  { %9 = vsyncpa [#allocation5], 0  ;;  %s188_s9 = smov [#allocation3]   ;;  %s140_s13 = scalar_lea.hbm %s252_s1, 256 }
   0x2   :  { %s17_s10 = sshll.u32 %s188_s9, 4  ;;  %p141_p0 = scmp.ne.s32.totalorder %s252_s1, %s140_s13  ;;  %s18_s10 = int_to_ptr.vmem [resolvable:$true] %s17_s10 }
   0x3   :  { %p144_p1 = scmp.lt.u32.totalorder %s140_s13, %s252_s1 }
   0x5   :  { %p146_p2 = pnand %p144_p1, %p141_p0 }
   0x7   :  { %149 = shalt.err (!%p146_p2)
}
   0x8   :  { %s150_s18 = scalar_lea.vmem %s18_s10, 256  ;;  %p155_p4 = scmp.lt.s32.totalorder %s18_s10, %s18_s10 }
   0x9   :  { %p151_p3 = scmp.ne.s32.totalorder %s18_s10, %s150_s18  ;;  %p156_p5 = scmp.lt.s32.totalorder %s150_s18, %s150_s18 }
   0xb   :  { %p157_p6 = por %p156_p5, %p155_p4 }
   0xd   :  { %p158_p7 = pnand %p157_p6, %p151_p3 }
   0xf   :  { %161 = shalt.err (!%p158_p7)
}
  0x10   :  { %s189_s19 = smov 128   ;;  %s190_s20 = smov 8  }
  0x11   :  { %23 = dma.hbm_to_vmem [thread:$0]  %s252_s1, 256, %s18_s10, [#allocation4], %s189_s19, %s189_s19, %s190_s20  }
  0x12   :  { %184 = dma.done.wait [#allocation4], 256  }
  0x13   :  { %185 = vsyncadd [#allocation4], 4294967040  ;;  %v27_v0 = vld [vmem:[#allocation3] sm:$0xff]  ;;  %s191_s23 = smov 1   ;;  %s192_s24 = smov 127   ;;  %v28_v1 = vld [vmem:[#allocation3 + $0x8] sm:$0xff]  ;;  %v44_v4 = vlaneseq  ;;  %v102_v36 = vstv %s251_s0 }
  0x14   :  { %30 = vrot.lane.b32.xlu0 %v27_v0, %s191_s23  ;;  %36 = vrot.lane.b32.xlu1 %v27_v0, %s192_s24  ;;  %v59_v20 = vmul.f32 4.0, %v28_v1  ;;  %v58_v23 = vmul.f32 4.0, %v27_v0  ;;  %s105_s26 = ssub.f32 1.0, %s251_s0  ;;  %v103_v40 = vmul.f32 %v102_v36, %v27_v0  ;;  %v104_v41 = vmul.f32 %v102_v36, %v28_v1  ;;  %s193_s29 = smov [#allocation6]  }
  0x15   :  { %v45_v7 = vshrl.u32 %v44_v4, 7  ;;  %v70_v11 = vand.u32 127, %v44_v4  ;;  %s122_s30 = sshll.u32 %s193_s29, 4  ;;  %s123_s30 = int_to_ptr.vmem [resolvable:$true] %s122_s30 }
  0x16   :  { %v106_v39 = vstv %s105_s26  ;;  %s162_s0 = scalar_lea.vmem %s123_s30, 256  ;;  %p167_p9 = scmp.lt.s32.totalorder %s123_s30, %s123_s30 }
  0x17   :  { %vm46_vm0 = vcmp.lt.s32.totalorder %v45_v7, 1  ;;  %vm53_vm1 = vcmp.lt.s32.totalorder %v45_v7, 7  ;;  %v75_v16 = vand.u32 15, %v70_v11  ;;  %v68_v26 = vadd.s32 8, %v45_v7  ;;  %p163_p8 = scmp.ne.s32.totalorder %s123_s30, %s162_s0  ;;  %p168_p10 = scmp.lt.s32.totalorder %s162_s0, %s162_s0 }
  0x18   :  { %32 = vrot.lane.b32.xlu0 %v28_v1, %s191_s23  ;;  %38 = vrot.lane.b32.xlu1 %v28_v1, %s192_s24  ;;  %vm83_vm4 = vcmp.eq.s32.totalorder %v45_v7, 0 }
  0x19   :  { %vm224_vm2 = vcmp.eq.s32.totalorder %v75_v16, 0  ;;  %vm90_vm3 = vcmp.eq.s32.totalorder %v75_v16, 15  ;;  %vm86_vm6 = vcmp.eq.s32.totalorder %v68_v26, 15  ;;  %p169_p11 = por %p168_p10, %p167_p9 }
  0x1a   :  { %vm91_vm5 = vmor %vm224_vm2, %vm90_vm3 }
  0x1b   :  { %vm98_vm7 = vmor %vm83_vm4, %vm91_vm5  ;;  %p170_p12 = pnand %p169_p11, %p163_p8 }
  0x1c   :  { %vm99_vm8 = vmor %vm86_vm6, %vm91_vm5 }
  0x86   :  { %v31_v2 = vpop.permute.xlu0 %30  ;;  %v37_v3 = vpop.permute.xlu1 %36 }
  0x87   :  { %v34_v5 = vadd.f32 %v31_v2, %v27_v0 }
  0x89   :  { %v40_v9 = vadd.f32 %v37_v3, %v34_v5 }
  0x8a   :  { %v33_v6 = vpop.permute.xlu0 %32  ;;  %v39_v8 = vpop.permute.xlu1 %38 }
  0x8b   :  { %v35_v10 = vadd.f32 %v33_v6, %v28_v1  ;;  %v42_v13 = vrot.slane %v40_v9, 7  ;;  %v51_v17 = vrot.slane %v40_v9, 1 }
  0x8d   :  { %v41_v12 = vadd.f32 %v39_v8, %v35_v10 }
  0x8f   :  { %v43_v14 = vrot.slane %v41_v12, 7  ;;  %v52_v15 = vrot.slane %v41_v12, 1 }
  0x91   :  { %v47_v18 = vsel %vm46_vm0, %v42_v13, %v43_v14  ;;  %v48_v19 = vsel %vm46_vm0, %v43_v14, %v42_v13  ;;  %v54_v24 = vsel %vm53_vm1, %v51_v17, %v52_v15  ;;  %v55_v25 = vsel %vm53_vm1, %v52_v15, %v51_v17 }
  0x92   :  { %v49_v21 = vadd.f32 %v48_v19, %v40_v9  ;;  %v50_v22 = vadd.f32 %v47_v18, %v41_v12 }
  0x94   :  { %v56_v27 = vadd.f32 %v54_v24, %v49_v21  ;;  %v57_v28 = vadd.f32 %v55_v25, %v50_v22 }
  0x96   :  { %v60_v30 = vadd.f32 %v58_v23, %v56_v27  ;;  %v61_v31 = vadd.f32 %v59_v20, %v57_v28 }
  0x98   :  { %v62_v32 = vmul.f32 0.07692308, %v60_v30  ;;  %v63_v33 = vmul.f32 0.07692308, %v61_v31 }
  0x9a   :  { %v64_v34 = vmax.f32 %v62_v32, 0.0  ;;  %v65_v35 = vmax.f32 %v63_v33, 0.0 }
  0x9c   :  { %v67_v37 = vmin.f32 %v65_v35, 1.0  ;;  %v66_v38 = vmin.f32 %v64_v34, 1.0 }
  0x9e   :  { %v100_v42 = vsel %vm98_vm7, %v27_v0, %v66_v38  ;;  %v101_v43 = vsel %vm99_vm8, %v28_v1, %v67_v37 }
  0x9f   :  { %v107_v44 = vmul.f32 %v106_v39, %v100_v42  ;;  %v108_v45 = vmul.f32 %v106_v39, %v101_v43 }
  0xa1   :  { %v109_v46 = vadd.f32 %v107_v44, %v103_v40  ;;  %v110_v47 = vadd.f32 %v108_v45, %v104_v41 }
  0xa3   :  { %v111_v48 = vmax.f32 %v109_v46, 0.0  ;;  %v112_v49 = vmax.f32 %v110_v47, 0.0 }
  0xa5   :  { %v113_v50 = vmin.f32 %v111_v48, 1.0  ;;  %v114_v51 = vmin.f32 %v112_v49, 1.0 }
  0xa7   :  { %115 = vst [vmem:[#allocation6] sm:$0xff] %v113_v50  ;;  %116 = vst [vmem:[#allocation6 + $0x8] sm:$0xff] %v114_v51 }
  0xa8   :  { %173 = shalt.err (!%p170_p12)
}
  0xa9   :  { %s174_s5 = scalar_lea.hbm %s253_s2, 256 }
  0xaa   :  { %p175_p13 = scmp.ne.s32.totalorder %s253_s2, %s174_s5  ;;  %p178_p0 = scmp.lt.u32.totalorder %s174_s5, %s253_s2 }
  0xac   :  { %p180_p1 = pnand %p178_p0, %p175_p13 }
  0xae   :  { %183 = shalt.err (!%p180_p1)
}
  0xaf   :  { %128 = dma.vmem_to_hbm [thread:$0]  %s123_s30, 256, %s253_s2, [#allocation5], %s189_s19, %s189_s19, %s190_s20  }
  0xb0   :  { %186 = dma.done.wait [#allocation5], 256  }
  0xb1   :  { %187 = vsyncadd [#allocation5], 4294967040 }
  0xb2   :  { %132 = vsyncpa [#allocation4], 1 }
  0xb3   :  { %133 = vsyncpa [#allocation5], 1 }

</bundles_post_ra>
